<compile_context>
chip_gen: v5e
topology: v5e:2x2
jax: 0.10.0
libtpu: 0.0.40
codegen_flags: <defaults>
</compile_context>

<pallas_src>
import functools

import jax
import jax.numpy as jnp
from jax.experimental import pallas as pl
from jax.experimental.pallas import tpu as pltpu


def _round_up(n, m):
    return ((n + m - 1) // m) * m


def se_kernel(s_total, ts, x_ref, w1_ref, b1_ref, w2_ref, b2_ref, o_ref, acc_ref):
    i = pl.program_id(0)

    @pl.when(i == 0)
    def _():
        acc_ref[...] = jnp.zeros_like(acc_ref)

    # --- net forward (per-sample MLP), bf16 MXU operands / f32 accumulate ----
    x = x_ref[...]                                                    # [TS, Dp] bf16
    h = jnp.dot(x, w1_ref[...], preferred_element_type=jnp.float32)   # [TS, Hp] f32
    h = jnp.maximum(h + b1_ref[...], 0.0)                             # ReLU in f32
    out = jnp.dot(h.astype(jnp.bfloat16), w2_ref[...],
                  preferred_element_type=jnp.float32) + b2_ref[...]   # [TS, Cp] f32
    # Padded C / H columns are exactly zero (zero-padded weights & biases),
    # so they do not perturb the L1 norm below.

    # --- SE head: F.normalize(out, p=1, dim=1) then sum (mean finalized later)
    l1 = jnp.sum(jnp.abs(out), axis=1, keepdims=True)                 # [TS, 1]
    inv = pl.reciprocal(jnp.maximum(l1, 1e-12), approx=False)         # EUP recip
    normed = out * inv                                                # [TS, Cp]

    # Mask padded sample rows so the mean is over the true S rows only.
    row = i * ts + jax.lax.broadcasted_iota(jnp.int32, normed.shape, 0)
    normed = jnp.where(row < s_total, normed, 0.0)

    acc_ref[...] += jnp.sum(normed, axis=0, keepdims=True)            # [1, Cp]

    @pl.when(i == pl.num_programs(0) - 1)
    def _():
        o_ref[...] = acc_ref[...] * (1.0 / s_total)


def se_forward(x, w1, b1, w2, b2, *, ts=None):
    S, D = x.shape
    H = w1.shape[1]
    C = w2.shape[1]

    # Lane-dense padding (multiples of 128 on the last axes).
    Dp, Hp, Cp = _round_up(D, 128), _round_up(H, 128), _round_up(C, 128)

    # Sample-tile size: multiple of 8 sublanes, up to 512 rows per tile.
    Sp8 = _round_up(S, 8)
    TS = _round_up(min(512, Sp8) if ts is None else ts, 8)
    Sp = _round_up(Sp8, TS)
    num_tiles = Sp // TS

    # Zero-pad + cast MXU operands to bf16; biases stay f32.
    xp = jnp.zeros((Sp, Dp), jnp.bfloat16).at[:S, :D].set(x.astype(jnp.bfloat16))
    w1p = jnp.zeros((Dp, Hp), jnp.bfloat16).at[:D, :H].set(w1.astype(jnp.bfloat16))
    b1p = jnp.zeros((1, Hp), jnp.float32).at[:, :H].set(b1.astype(jnp.float32))
    w2p = jnp.zeros((Hp, Cp), jnp.bfloat16).at[:H, :C].set(w2.astype(jnp.bfloat16))
    b2p = jnp.zeros((1, Cp), jnp.float32).at[:, :C].set(b2.astype(jnp.float32))

    # VMEM budget: double-buffered x tile + resident weights/biases + acc/out.
    est = (2 * TS * Dp * 2                       # x tile (bf16, 2 buffers)
           + 2 * (Dp * Hp * 2 + Hp * Cp * 2)     # weights (bf16, 2 buffers)
           + 2 * (Hp * 4 + Cp * 4)               # biases (f32, 2 buffers)
           + 2 * Cp * 4 + Cp * 4                 # output + accumulator
           + TS * Hp * 4 + TS * Cp * 4)          # live activations
    vmem_limit = int(min(max(2 * est, 16 * 2**20), 64 * 2**20))

    kernel = functools.partial(se_kernel, S, TS)

    out = pl.pallas_call(
        kernel,
        out_shape=jax.ShapeDtypeStruct((1, Cp), jnp.float32),
        grid=(num_tiles,),
        in_specs=[
            pl.BlockSpec((TS, Dp), lambda i: (i, 0)),   # streamed x tiles
            pl.BlockSpec((Dp, Hp), lambda i: (0, 0)),   # resident W1
            pl.BlockSpec((1, Hp), lambda i: (0, 0)),    # resident b1
            pl.BlockSpec((Hp, Cp), lambda i: (0, 0)),   # resident W2
            pl.BlockSpec((1, Cp), lambda i: (0, 0)),    # resident b2
        ],
        out_specs=pl.BlockSpec((1, Cp), lambda i: (0, 0)),
        scratch_shapes=[pltpu.VMEM((1, Cp), jnp.float32)],
        compiler_params=pltpu.CompilerParams(
            dimension_semantics=("arbitrary",),         # S-axis is a reduction
            vmem_limit_bytes=vmem_limit,
        ),
    )(xp, w1p, b1p, w2p, b2p)

    return out[0, :C]  # [C]


def se_reference(x, w1, b1, w2, b2):
    # Mirrors the kernel numerics: bf16-rounded MXU operands, f32 accumulation.
    xf = x.astype(jnp.bfloat16).astype(jnp.float32)
    w1f = w1.astype(jnp.bfloat16).astype(jnp.float32)
    w2f = w2.astype(jnp.bfloat16).astype(jnp.float32)
    h = jnp.maximum(xf @ w1f + b1.astype(jnp.float32), 0.0)
    hb = h.astype(jnp.bfloat16).astype(jnp.float32)
    out = hb @ w2f + b2.astype(jnp.float32)
    l1 = jnp.sum(jnp.abs(out), axis=1, keepdims=True)
    return jnp.mean(out / jnp.maximum(l1, 1e-12), axis=0)


if __name__ == "__main__":
    S, D, H, C = 8, 32, 32, 4   # samples, feature dim, hidden dim, classes

    key = jax.random.PRNGKey(0)
    kx, k1, k2, k3, k4 = jax.random.split(key, 5)

    x = jax.random.normal(kx, (S, D), dtype=jnp.float32)
    w1 = jax.random.normal(k1, (D, H), dtype=jnp.float32) * 0.1
    b1 = jax.random.normal(k2, (1, H), dtype=jnp.float32) * 0.1
    w2 = jax.random.normal(k3, (H, C), dtype=jnp.float32) * 0.1
    b2 = jax.random.normal(k4, (1, C), dtype=jnp.float32) * 0.1

    y = jax.block_until_ready(se_forward(x, w1, b1, w2, b2))

    y_ref = se_reference(x, w1, b1, w2, b2)
    assert y.shape == (C,)
    assert jnp.allclose(y, y_ref, atol=2e-3, rtol=2e-3), (y, y_ref)

    print("KERNEL_OK")
</pallas_src>

<mosaic_0001>
module attributes {stable_mosaic.version = 11 : i64} {
  func.func @se_kernel(%arg0: i32, %arg1: memref<8x128xbf16, #tpu.memory_space<vmem>>, %arg2: memref<128x128xbf16, #tpu.memory_space<vmem>>, %arg3: memref<1x128xf32, #tpu.memory_space<vmem>>, %arg4: memref<128x128xbf16, #tpu.memory_space<vmem>>, %arg5: memref<1x128xf32, #tpu.memory_space<vmem>>, %arg6: memref<1x128xf32, #tpu.memory_space<vmem>>, %arg7: memref<1x128xf32, #tpu.memory_space<vmem>>) attributes {dimension_semantics = [#tpu.dimension_semantics<arbitrary>], iteration_bounds = array<i64: 1>, scalar_prefetch = 0 : i64, scratch_operands = 1 : i64, tpu.core_type = #tpu.core_type<tc>, window_params = [{transform_indices = @transform_0, window_bounds = array<i64: 8, 128>}, {pipeline_mode = #tpu.pipeline_mode<synchronous>, transform_indices = @transform_1, window_bounds = array<i64: 128, 128>}, {pipeline_mode = #tpu.pipeline_mode<synchronous>, transform_indices = @transform_2, window_bounds = array<i64: 1, 128>}, {pipeline_mode = #tpu.pipeline_mode<synchronous>, transform_indices = @transform_3, window_bounds = array<i64: 128, 128>}, {pipeline_mode = #tpu.pipeline_mode<synchronous>, transform_indices = @transform_4, window_bounds = array<i64: 1, 128>}, {pipeline_mode = #tpu.pipeline_mode<synchronous>, transform_indices = @transform_5, window_bounds = array<i64: 1, 128>}]} {
    %c0_i32 = arith.constant 0 : i32
    %0 = arith.cmpi eq, %arg0, %c0_i32 : i32
    %1 = arith.extui %0 : i1 to i32
    %c0_i32_0 = arith.constant 0 : i32
    %2 = arith.cmpi ne, %1, %c0_i32_0 : i32
    scf.if %2 {
      %cst_23 = arith.constant 0.000000e+00 : f32
      %41 = vector.broadcast %cst_23 : f32 to vector<1x128xf32>
      %c0_24 = arith.constant 0 : index
      %c0_25 = arith.constant 0 : index
      %42 = vector.load %arg7[%c0_24, %c0_25] : memref<1x128xf32, #tpu.memory_space<vmem>>, vector<1x128xf32>
      tpu.vector_store %arg7[%c0_24, %c0_25], %41 {strides = array<i32>} : memref<1x128xf32, #tpu.memory_space<vmem>>, vector<1x128xf32>,
    } else {
    }
    %c0 = arith.constant 0 : index
    %c0_1 = arith.constant 0 : index
    %3 = vector.load %arg1[%c0, %c0_1] : memref<8x128xbf16, #tpu.memory_space<vmem>>, vector<8x128xbf16>
    %c0_2 = arith.constant 0 : index
    %c0_3 = arith.constant 0 : index
    %4 = vector.load %arg2[%c0_2, %c0_3] : memref<128x128xbf16, #tpu.memory_space<vmem>>, vector<128x128xbf16>
    %cst = arith.constant dense<0.000000e+00> : vector<8x128xf32>
    %5 = tpu.matmul %3, %4, %cst {dimension_numbers = #tpu.dot_dimension_numbers<[1], [0], [0], [1], [0, 0, 1, 1], [], []>} : vector<8x128xbf16>, vector<128x128xbf16>, vector<8x128xf32> -> vector<8x128xf32>
    %c0_4 = arith.constant 0 : index
    %c0_5 = arith.constant 0 : index
    %6 = vector.load %arg3[%c0_4, %c0_5] : memref<1x128xf32, #tpu.memory_space<vmem>>, vector<1x128xf32>
    %7 = vector.broadcast %6 : vector<1x128xf32> to vector<8x128xf32>
    %8 = arith.addf %5, %7 : vector<8x128xf32>
    %cst_6 = arith.constant 0.000000e+00 : f32
    %9 = vector.broadcast %cst_6 : f32 to vector<8x128xf32>
    %10 = arith.maximumf %8, %9 : vector<8x128xf32>
    %11 = arith.truncf %10 : vector<8x128xf32> to vector<8x128xbf16>
    %c0_7 = arith.constant 0 : index
    %c0_8 = arith.constant 0 : index
    %12 = vector.load %arg4[%c0_7, %c0_8] : memref<128x128xbf16, #tpu.memory_space<vmem>>, vector<128x128xbf16>
    %cst_9 = arith.constant dense<0.000000e+00> : vector<8x128xf32>
    %13 = tpu.matmul %11, %12, %cst_9 {dimension_numbers = #tpu.dot_dimension_numbers<[1], [0], [0], [1], [0, 0, 1, 1], [], []>} : vector<8x128xbf16>, vector<128x128xbf16>, vector<8x128xf32> -> vector<8x128xf32>
    %c0_10 = arith.constant 0 : index
    %c0_11 = arith.constant 0 : index
    %14 = vector.load %arg5[%c0_10, %c0_11] : memref<1x128xf32, #tpu.memory_space<vmem>>, vector<1x128xf32>
    %15 = vector.broadcast %14 : vector<1x128xf32> to vector<8x128xf32>
    %16 = arith.addf %13, %15 : vector<8x128xf32>
    %17 = math.absf %16 : vector<8x128xf32>
    %cst_12 = arith.constant dense<0.000000e+00> : vector<8xf32>
    %18 = vector.multi_reduction <add>, %17, %cst_12 [1] : vector<8x128xf32> to vector<8xf32>
    %19 = vector.shape_cast %18 : vector<8xf32> to vector<8x1xf32>
    %cst_13 = arith.constant 9.99999996E-13 : f32
    %20 = vector.broadcast %cst_13 : f32 to vector<8x1xf32>
    %21 = arith.maximumf %19, %20 : vector<8x1xf32>
    %22 = tpu.reciprocal %21 : vector<8x1xf32> -> vector<8x1xf32>
    %23 = vector.broadcast %22 : vector<8x1xf32> to vector<8x128xf32>
    %24 = arith.mulf %16, %23 : vector<8x128xf32>
    %c8_i32 = arith.constant 8 : i32
    %25 = arith.muli %arg0, %c8_i32 : i32
    %26 = tpu.iota {dimensions = array<i32: 0>} : vector<8x128xi32>
    %27 = vector.broadcast %25 : i32 to vector<8x128xi32>
    %28 = arith.addi %27, %26 : vector<8x128xi32>
    %c8_i32_14 = arith.constant 8 : i32
    %29 = vector.broadcast %c8_i32_14 : i32 to vector<8x128xi32>
    %30 = arith.cmpi slt, %28, %29 : vector<8x128xi32>
    %cst_15 = arith.constant 0.000000e+00 : f32
    %31 = vector.broadcast %cst_15 : f32 to vector<8x128xf32>
    %32 = arith.select %30, %24, %31 : vector<8x128xi1>, vector<8x128xf32>
    %c0_16 = arith.constant 0 : index
    %c0_17 = arith.constant 0 : index
    %33 = vector.load %arg7[%c0_16, %c0_17] : memref<1x128xf32, #tpu.memory_space<vmem>>, vector<1x128xf32>
    %cst_18 = arith.constant dense<0.000000e+00> : vector<128xf32>
    %34 = vector.multi_reduction <add>, %32, %cst_18 [0] : vector<8x128xf32> to vector<128xf32>
    %35 = vector.shape_cast %34 : vector<128xf32> to vector<1x128xf32>
    %36 = arith.addf %33, %35 : vector<1x128xf32>
    %c0_19 = arith.constant 0 : index
    %c0_20 = arith.constant 0 : index
    %37 = vector.load %arg7[%c0_19, %c0_20] : memref<1x128xf32, #tpu.memory_space<vmem>>, vector<1x128xf32>
    tpu.vector_store %arg7[%c0_19, %c0_20], %36 {strides = array<i32>} : memref<1x128xf32, #tpu.memory_space<vmem>>, vector<1x128xf32>,
    %c0_i32_21 = arith.constant 0 : i32
    %38 = arith.cmpi eq, %arg0, %c0_i32_21 : i32
    %39 = arith.extui %38 : i1 to i32
    %c0_i32_22 = arith.constant 0 : i32
    %40 = arith.cmpi ne, %39, %c0_i32_22 : i32
    scf.if %40 {
      %c0_23 = arith.constant 0 : index
      %c0_24 = arith.constant 0 : index
      %41 = vector.load %arg7[%c0_23, %c0_24] : memref<1x128xf32, #tpu.memory_space<vmem>>, vector<1x128xf32>
      %cst_25 = arith.constant 1.250000e-01 : f32
      %42 = vector.broadcast %cst_25 : f32 to vector<1x128xf32>
      %43 = arith.mulf %41, %42 : vector<1x128xf32>
      %c0_26 = arith.constant 0 : index
      %c0_27 = arith.constant 0 : index
      %44 = vector.load %arg6[%c0_26, %c0_27] : memref<1x128xf32, #tpu.memory_space<vmem>>, vector<1x128xf32>
      tpu.vector_store %arg6[%c0_26, %c0_27], %43 {strides = array<i32>} : memref<1x128xf32, #tpu.memory_space<vmem>>, vector<1x128xf32>,
    } else {
    }
    return
  }
  func.func @transform_0(%arg0: i32) -> (i32, i32) {
    %c0_i32 = arith.constant 0 : i32
    %c0_i32_0 = arith.constant 0 : i32
    return %arg0, %c0_i32 : i32, i32
  }
  func.func @transform_1(%arg0: i32) -> (i32, i32) {
    %c0_i32 = arith.constant 0 : i32
    %c0_i32_0 = arith.constant 0 : i32
    %c0_i32_1 = arith.constant 0 : i32
    return %c0_i32, %c0_i32_0 : i32, i32
  }
  func.func @transform_2(%arg0: i32) -> (i32, i32) {
    %c0_i32 = arith.constant 0 : i32
    %c0_i32_0 = arith.constant 0 : i32
    %c0_i32_1 = arith.constant 0 : i32
    return %c0_i32, %c0_i32_0 : i32, i32
  }
  func.func @transform_3(%arg0: i32) -> (i32, i32) {
    %c0_i32 = arith.constant 0 : i32
    %c0_i32_0 = arith.constant 0 : i32
    %c0_i32_1 = arith.constant 0 : i32
    return %c0_i32, %c0_i32_0 : i32, i32
  }
  func.func @transform_4(%arg0: i32) -> (i32, i32) {
    %c0_i32 = arith.constant 0 : i32
    %c0_i32_0 = arith.constant 0 : i32
    %c0_i32_1 = arith.constant 0 : i32
    return %c0_i32, %c0_i32_0 : i32, i32
  }
  func.func @transform_5(%arg0: i32) -> (i32, i32) {
    %c0_i32 = arith.constant 0 : i32
    %c0_i32_0 = arith.constant 0 : i32
    %c0_i32_1 = arith.constant 0 : i32
    return %c0_i32, %c0_i32_0 : i32, i32
  }
}

</mosaic_0001>

<bundles_post_ra>
// kernel: tpu_custom_call.1
= control target key start
LH: loop header
LB: loop body
LE: loop exit
PB: predicated region body
PF: predicated region fallthrough
CT: control target
= control target key end

     0   :  { %10 = vsyncpa [#allocation4], 0  ;;  %s543_s0 = inlined_call_operand.hbm [shape: bf16[8,128], index: 0, kind: input, shape index: {}]   ;;  %s544_s1 = inlined_call_operand.hbm [shape: bf16[128,128], index: 1, kind: input, shape index: {}]   ;;  %s545_s2 = inlined_call_operand.vmem [shape: f32[1,128], index: 2, kind: input, shape index: {}]   ;;  %s546_s3 = inlined_call_operand.hbm [shape: bf16[128,128], index: 3, kind: input, shape index: {}]   ;;  %s547_s4 = inlined_call_operand.vmem [shape: f32[1,128], index: 4, kind: input, shape index: {}]   ;;  %s548_s5 = inlined_call_operand.hbm [shape: f32[1,128], index: 5, kind: output, shape index: {}]  }
   0x1   :  { %11 = vsyncpa [#allocation7], 0  ;;  %s28_s20 = sshll.u32 %s544_s1, 4  ;;  %s29_s20 = int_to_ptr.hbm [resolvable:$true] %s28_s20 }
   0x2   :  { %12 = vsyncpa [#allocation5], 0  ;;  %s488_s21 = smov [#allocation6]   ;;  %s18_s25 = sshll.u32 %s543_s0, 4  ;;  %s19_s25 = int_to_ptr.hbm [resolvable:$true] %s18_s25 }
   0x3   :  { %s30_s22 = sshll.u32 %s488_s21, 4  ;;  %s489_s26 = smov 64   ;;  %s31_s22 = int_to_ptr.vmem [resolvable:$true] %s30_s22 }
   0x4   :  { %s490_s27 = smov 4   ;;  %s491_s28 = smov [#allocation3]  }
   0x5   :  { %36 = dma.hbm_to_vmem [thread:$0]  %s29_s20, 1024, %s31_s22, [#allocation7], %s489_s26, %s489_s26, %s490_s27  }
   0x6   :  { %s20_s29 = sshll.u32 %s491_s28, 4  ;;  %s43_s7 = sshll.u32 %s546_s3, 4  ;;  %s21_s29 = int_to_ptr.vmem [resolvable:$true] %s20_s29  ;;  %s44_s7 = int_to_ptr.hbm [resolvable:$true] %s43_s7 }
   0x7   :  { %23 = dma.hbm_to_vmem [thread:$0]  %s19_s25, 64, %s21_s29, [#allocation4]  }
   0x8   :  { %s492_s1 = smov [#allocation8]  }
   0x9   :  { %s45_s8 = sshll.u32 %s492_s1, 4  ;;  %s46_s8 = int_to_ptr.vmem [resolvable:$true] %s45_s8 }
   0xa   :  { %51 = dma.hbm_to_vmem [thread:$0]  %s44_s7, 1024, %s46_s8, [#allocation7], %s489_s26, %s489_s26, %s490_s27  }
   0xb   :  { %482 = dma.done.wait [#allocation4], 64  }
   0xc   :  { %483 = vsyncadd [#allocation4], 4294967232 }
   0xd   :  { %484 = dma.done.wait [#allocation7], 2048  }
   0xe   :  { %485 = vsyncadd [#allocation7], 4294965248  ;;  %v366_v0 = vld [vmem:[#allocation6 + $0x38] sm:$0xff]  ;;  %v365_v1 = vld [vmem:[#allocation6 + $0x30] sm:$0xff]  ;;  %v493_v23 = vmov 0.0   ;;  %s284_s13 = sshll.u32 %s548_s5, 4  ;;  %s285_s13 = int_to_ptr.hbm [resolvable:$true] %s284_s13 }
   0xf   :  { %140 = vmatpush.bf16.msra.mxu0 %v366_v0  ;;  %v374_v2 = vld [vmem:[#allocation8 + $0x38] sm:$0xff]  ;;  %v373_v3 = vld [vmem:[#allocation8 + $0x30] sm:$0xff]  ;;  %v364_v4 = vld [vmem:[#allocation6 + $0x28] sm:$0xff]  ;;  %70 = vst [vmem:[#allocation2] sm:$0x1] %v493_v23 }
  0x10   :  { %223 = vmatpush.bf16.msra.mxu1 %v374_v2  ;;  %v372_v5 = vld [vmem:[#allocation8 + $0x28] sm:$0xff]  ;;  %v363_v6 = vld [vmem:[#allocation6 + $0x20] sm:$0xff]  ;;  %v362_v8 = vld [vmem:[#allocation6 + $0x18] sm:$0xff] }
  0x11   :  { %v371_v7 = vld [vmem:[#allocation8 + $0x20] sm:$0xff]  ;;  %v370_v9 = vld [vmem:[#allocation8 + $0x18] sm:$0xff]  ;;  %v361_v10 = vld [vmem:[#allocation6 + $0x10] sm:$0xff] }
  0x12   :  { %v369_v11 = vld [vmem:[#allocation8 + $0x10] sm:$0xff]  ;;  %v360_v12 = vld [vmem:[#allocation6 + $0x8] sm:$0xff]  ;;  %v359_v13 = vld [vmem:[#allocation6] sm:$0xff] }
  0x13   :  { %141 = vmatpush.bf16.msra.mxu0 %v365_v1  ;;  %v71_v14 = vld [vmem:[#allocation3] sm:$0xf]  ;;  %v368_v15 = vld [vmem:[#allocation8 + $0x8] sm:$0xff]  ;;  %v367_v16 = vld [vmem:[#allocation8] sm:$0xff] }
  0x14   :  { %224 = vmatpush.bf16.msra.mxu1 %v373_v3  ;;  %v382_v17 = vld [vmem:[%s545_s2] ss:$0 sm:$0xff]  ;;  %s494_s2 = smov [#allocation9]  }
  0x15   :  { %v383_v24 = vld [vmem:[%s547_s4] ss:$0 sm:$0xff]  ;;  %s282_s4 = sshll.u32 %s494_s2, 4  ;;  %s283_s4 = int_to_ptr.vmem [resolvable:$true] %s282_s4 }
  0x16   :  { %v262_v47 = vld [vmem:[#allocation2] sm:$0x1] }
  0x17   :  { %142 = vmatpush.bf16.msra.mxu0 %v364_v4 }
  0x18   :  { %225 = vmatpush.bf16.msra.mxu1 %v372_v5 }
  0x1b   :  { %143 = vmatpush.bf16.msra.mxu0 %v363_v6 }
  0x1c   :  { %226 = vmatpush.bf16.msra.mxu1 %v371_v7 }
  0x1f   :  { %144 = vmatpush.bf16.msra.mxu0 %v362_v8 }
  0x20   :  { %227 = vmatpush.bf16.msra.mxu1 %v370_v9 }
  0x23   :  { %145 = vmatpush.bf16.msra.mxu0 %v361_v10 }
  0x24   :  { %228 = vmatpush.bf16.msra.mxu1 %v369_v11 }
  0x27   :  { %146 = vmatpush.bf16.msra.mxu0 %v360_v12 }
  0x28   :  { %229 = vmatpush.bf16.msra.mxu1 %v368_v15 }
  0x2b   :  { %147 = vmatpush.bf16.msra.mxu0 %v359_v13 }
  0x2c   :  { %230 = vmatpush.bf16.msra.mxu1 %v367_v16 }
  0x2e   :  { %148 = vmatmul.bf16.vlgmr.msra.gmra.mxu0 %v71_v14 }
  0xab   :  { %v149_v18 = vpop.f32.mrf.mxu0 }
  0xac   :  { %v150_v19 = vadd.f32 %v382_v17, %v149_v18 }
  0xae   :  { %v153_v20 = vmax.f32 %v150_v19, 0.0 }
  0xb0   :  { %v154_v21 = vpack.c.bf16 %v153_v20, %v153_v20 }
  0xb2   :  { %231 = vmatmul.bf16.vlgmr.msra.gmra.mxu1 %v154_v21 }
  0xb3   :  { %v151_v22 = vpop.f32.mrf.mxu0 }
 0x12f   :  { %v232_v25 = vpop.f32.mrf.mxu1 }
 0x130   :  { %v233_v26 = vadd.f32 %v383_v24, %v232_v25 }
 0x132   :  { %v236_v27 = vand.u32 2147483647, %v233_v26 }
 0x134   :  { %237 = vadd.xlane.f32.xlu0 %v236_v27 }
 0x137   :  { %v234_v28 = vpop.f32.mrf.mxu1 }
 0x1a7   :  { %v238_v29 = vpop.xlane.xlu0 %237 }
 0x1a8   :  { %v239_v30 = vmax.f32 %v238_v29, 1e-12 }
 0x1aa   :  { %384 = vrcp.f32 %v239_v30  ;;  %v251_v34 = vand.u32 2147483648, %v239_v30  ;;  %v249_v36 = vand.u32 2147483647, %v239_v30  ;;  %vm245_vm1 = vweird.f32 %v239_v30 }
 0x1ac   :  { %v252_v38 = vor.u32 1.1754944e-38, %v251_v34  ;;  %vm250_vm3 = vcmp.eq.f32.partialorder %v249_v36, 8.507059e+37 }
 0x1b0   :  { %v385_v31 = vpop.eup %384 }
 0x1b1   :  { %v241_v32 = vmul.f32 %v385_v31, %v239_v30  ;;  %vm246_vm0 = vweird.f32 %v385_v31 }
 0x1b2   :  { %vm247_vm2 = vmor %vm245_vm1, %vm246_vm0 }
 0x1b3   :  { %v242_v33 = vsub.f32 1.0, %v241_v32 }
 0x1b5   :  { %v243_v35 = vmul.f32 %v385_v31, %v242_v33 }
 0x1b7   :  { %v244_v37 = vadd.f32 %v385_v31, %v243_v35 }
 0x1b9   :  { %v248_v39 = vsel %vm247_vm2, %v385_v31, %v244_v37 }
 0x1ba   :  { %v253_v40 = vsel %vm250_vm3, %v252_v38, %v248_v39 }
 0x1bb   :  { %v254_v41 = vmul.f32 %v253_v40, %v233_v26 }
 0x1bd   :  { %v263_v42 = vrot.slane %v254_v41, 4 }
 0x1bf   :  { %v264_v43 = vadd.f32 %v263_v42, %v254_v41 }
 0x1c1   :  { %v265_v44 = vrot.slane %v264_v43, 2 }
 0x1c3   :  { %v266_v45 = vadd.f32 %v265_v44, %v264_v43 }
 0x1c5   :  { %v267_v46 = vrot.slane %v266_v45, 1 }
 0x1c7   :  { %v268_v48 = vadd.f32 %v267_v46, %v266_v45 }
 0x1c9   :  { %v269_v49 = vadd.f32 %v268_v48, %v262_v47 }
 0x1cb   :  { %270 = vst [vmem:[#allocation2] sm:$0x1] %v269_v49 }
 0x1d2   :  { %v274_v50 = vld [vmem:[#allocation2] sm:$0x1] }
 0x1d3   :  { %v275_v51 = vmul.f32 0.125, %v274_v50 }
 0x1d5   :  { %276 = vst [vmem:[#allocation9] sm:$0x1] %v275_v51 }
 0x1d6   :  { %287 = dma.vmem_to_hbm [thread:$0]  %s283_s4, 16, %s285_s13, [#allocation5]  }
 0x1d7   :  { %486 = dma.done.wait [#allocation5], 16  }
 0x1d8   :  { %487 = vsyncadd [#allocation5], 4294967280 }
 0x1d9   :  { %292 = vsyncpa [#allocation4], 1 }
 0x1da   :  { %293 = vsyncpa [#allocation7], 1 }
 0x1db   :  { %294 = vsyncpa [#allocation5], 1 }

</bundles_post_ra>
